<compile_context>
chip_gen: v7x
topology: tpu7x:2x2x1
jax: 0.10.0
libtpu: 0.0.40
codegen_flags: <defaults>
</compile_context>

<pallas_src>
import functools

import jax
import jax.numpy as jnp
from jax.experimental import pallas as pl
from jax.experimental.pallas import tpu as pltpu


_DEFAULT_SCOPED_VMEM = 32 * 1024 * 1024


def _compiler_params(dimension_semantics, vmem_need_bytes):
    limit = None
    if vmem_need_bytes > _DEFAULT_SCOPED_VMEM:
        limit = min(int(vmem_need_bytes * 1.25), 100 * 1024 * 1024)
    return pltpu.CompilerParams(dimension_semantics=dimension_semantics,
                                vmem_limit_bytes=limit)


def _nbytes(*arrays):
    return int(sum(a.size * a.dtype.itemsize for a in arrays))


def _pick_hw_block(hw, c, itemsize, target_bytes=2 * 1024 * 1024):
    """Largest lane-aligned HW block (~<= target bytes per (C, hw_blk) tile) dividing HW."""
    if c * hw * itemsize <= target_bytes or hw <= 128:
        return hw
    max_blk = max(128, (target_bytes // (c * itemsize)) // 128 * 128)
    blk = min(max_blk, (hw // 128) * 128)
    while blk >= 128:
        if hw % blk == 0:
            return blk
        blk -= 128
    return hw  # no lane-aligned divisor of HW; fall back to the full row


# ---------------------------------------------------------------------------
# shared SE-MLP (operates on values, not refs)
# ---------------------------------------------------------------------------
def _mlp_scales(x_l, x_g, wsq_t, wsq_b, bsq, wel, bel, weg, beg):
    """x_l, x_g: (bm, C) fp32 pooled features -> (s_l + 1, s_g + 1), each (bm, C)."""
    c_half = wel.shape[0]
    # fused squeeze: columns [:C/2] are the L-branch hidden, [C/2:] the G-branch
    h = (jnp.dot(x_l, wsq_t, preferred_element_type=jnp.float32)
         + jnp.dot(x_g, wsq_b, preferred_element_type=jnp.float32)
         + bsq)                                               # (bm, C)
    h = jnp.maximum(h, 0.0)
    s_l = jax.nn.sigmoid(
        jnp.dot(h[:, :c_half], wel, preferred_element_type=jnp.float32) + bel) + 1.0
    s_g = jax.nn.sigmoid(
        jnp.dot(h[:, c_half:], weg, preferred_element_type=jnp.float32) + beg) + 1.0
    return s_l, s_g


# ---------------------------------------------------------------------------
# single-pass fused kernel (per-batch slab fits comfortably in VMEM)
# ---------------------------------------------------------------------------
def _ffm_fused_kernel(l_ref, g_ref, wsq_t_ref, wsq_b_ref, bsq_ref,
                      wel_ref, bel_ref, weg_ref, beg_ref,
                      out_l_ref, out_g_ref):
    inv_hw = 1.0 / l_ref.shape[-1]
    # GAP in fp32 (cast is expression-local; no full fp32 slab kept live)
    x_l = jnp.sum(l_ref[...].astype(jnp.float32), axis=-1) * inv_hw   # (1, C)
    x_g = jnp.sum(g_ref[...].astype(jnp.float32), axis=-1) * inv_hw
    s_l, s_g = _mlp_scales(x_l, x_g,
                           wsq_t_ref[...], wsq_b_ref[...], bsq_ref[...],
                           wel_ref[...], bel_ref[...],
                           weg_ref[...], beg_ref[...])
    # residual folded into (s + 1): one multiply per element, input dtype
    out_l_ref[...] = (l_ref[...] * s_l.astype(l_ref.dtype)[:, :, None]).astype(out_l_ref.dtype)
    out_g_ref[...] = (g_ref[...] * s_g.astype(g_ref.dtype)[:, :, None]).astype(out_g_ref.dtype)


def _ffm_fused(Lf, Gf, weights):
    B, C, HW = Lf.shape
    lg_spec = pl.BlockSpec((1, C, HW), lambda b: (b, 0, 0))
    w_specs = [pl.BlockSpec(w.shape, lambda b: (0, 0)) for w in weights]

    vmem_need = 8 * C * HW * Lf.dtype.itemsize + _nbytes(*weights)
    out_l, out_g = pl.pallas_call(
        _ffm_fused_kernel,
        out_shape=(jax.ShapeDtypeStruct((B, C, HW), Lf.dtype),
                   jax.ShapeDtypeStruct((B, C, HW), Gf.dtype)),
        grid=(B,),
        in_specs=[lg_spec, lg_spec] + w_specs,
        out_specs=(lg_spec, lg_spec),
        compiler_params=_compiler_params(("parallel",), vmem_need),
    )(Lf, Gf, *weights)
    return out_l, out_g


# ---------------------------------------------------------------------------
# two-pass streaming path (per-batch slab too big for one VMEM-resident block)
# ---------------------------------------------------------------------------
def _ffm_gap_mlp_kernel(l_ref, g_ref, wsq_t_ref, wsq_b_ref, bsq_ref,
                        wel_ref, bel_ref, weg_ref, beg_ref,
                        sl_ref, sg_ref, accl_ref, accg_ref, *, inv_hw):
    h_idx = pl.program_id(1)

    @pl.when(h_idx == 0)
    def _():
        accl_ref[...] = jnp.zeros_like(accl_ref)
        accg_ref[...] = jnp.zeros_like(accg_ref)

    # fp32 accumulation of the spatial sum (GAP numerator)
    accl_ref[...] += jnp.sum(l_ref[...].astype(jnp.float32), axis=-1)
    accg_ref[...] += jnp.sum(g_ref[...].astype(jnp.float32), axis=-1)

    @pl.when(h_idx == pl.num_programs(1) - 1)
    def _():
        x_l = accl_ref[...] * inv_hw                          # (1, C)
        x_g = accg_ref[...] * inv_hw
        s_l, s_g = _mlp_scales(x_l, x_g,
                               wsq_t_ref[...], wsq_b_ref[...], bsq_ref[...],
                               wel_ref[...], bel_ref[...],
                               weg_ref[...], beg_ref[...])
        sl_ref[...] = s_l[:, :, None]
        sg_ref[...] = s_g[:, :, None]


def _ffm_reweight_kernel(l_ref, g_ref, sl_ref, sg_ref, out_l_ref, out_g_ref):
    # (s + 1) applied as a single per-element multiply, in the input dtype.
    out_l_ref[...] = (l_ref[...] * sl_ref[...].astype(l_ref.dtype)).astype(out_l_ref.dtype)
    out_g_ref[...] = (g_ref[...] * sg_ref[...].astype(g_ref.dtype)).astype(out_g_ref.dtype)


def _ffm_two_pass(Lf, Gf, weights):
    B, C, HW = Lf.shape
    itemsize = Lf.dtype.itemsize
    hw_blk = _pick_hw_block(HW, C, itemsize)
    n_hw = HW // hw_blk

    lg_spec = pl.BlockSpec((1, C, hw_blk), lambda b, h: (b, 0, h))
    sc_spec = pl.BlockSpec((1, C, 1), lambda b, h: (b, 0, 0))
    w_specs = [pl.BlockSpec(w.shape, lambda b, h: (0, 0)) for w in weights]

    # --- pass 1: GAP + SE-MLP -> (s + 1) scales, shape (B, C, 1) ------------
    vmem1 = 4 * C * hw_blk * itemsize + _nbytes(*weights) + 8 * C * 4
    scale_l, scale_g = pl.pallas_call(
        functools.partial(_ffm_gap_mlp_kernel, inv_hw=1.0 / HW),
        out_shape=(jax.ShapeDtypeStruct((B, C, 1), jnp.float32),
                   jax.ShapeDtypeStruct((B, C, 1), jnp.float32)),
        grid=(B, n_hw),
        in_specs=[lg_spec, lg_spec] + w_specs,
        out_specs=(sc_spec, sc_spec),
        scratch_shapes=[pltpu.VMEM((1, C), jnp.float32),
                        pltpu.VMEM((1, C), jnp.float32)],
        compiler_params=_compiler_params(("parallel", "arbitrary"), vmem1),
    )(Lf, Gf, *weights)

    # --- pass 2: streaming channel reweight out = x * (s + 1) ---------------
    vmem2 = 8 * C * hw_blk * itemsize + 16 * C * 4
    out_l, out_g = pl.pallas_call(
        _ffm_reweight_kernel,
        out_shape=(jax.ShapeDtypeStruct((B, C, HW), Lf.dtype),
                   jax.ShapeDtypeStruct((B, C, HW), Gf.dtype)),
        grid=(B, n_hw),
        in_specs=[lg_spec, lg_spec, sc_spec, sc_spec],
        out_specs=(lg_spec, lg_spec),
        compiler_params=_compiler_params(("parallel", "parallel"), vmem2),
    )(Lf, Gf, scale_l, scale_g)
    return out_l, out_g


# ---------------------------------------------------------------------------
# wrapper / params / reference
# ---------------------------------------------------------------------------
def _prep_weights(params, C):
    """nn.Linear(in, out) stores W (out, in) and computes X @ W.T + b.

    The channel concat X = [x_l | x_g] is folded by splitting the squeeze
    weights into their x_l / x_g halves; the L and G branches' squeeze weights
    are fused along the output axis (2 dots instead of 4).
    """
    wsl = params["w_sqz_l"].T                      # (2C, C/2)
    wsg = params["w_sqz_g"].T                      # (2C, C/2)
    w_sq = jnp.concatenate([wsl, wsg], axis=1)     # (2C, C): cols [L-hidden | G-hidden]
    wsq_t = w_sq[:C]                               # multiplies x_l   (C, C)
    wsq_b = w_sq[C:]                               # multiplies x_g   (C, C)
    bsq = jnp.concatenate([params["b_sqz_l"], params["b_sqz_g"]])[None, :]   # (1, C)
    wel = params["w_exc_l"].T                      # (C/2, C)
    weg = params["w_exc_g"].T                      # (C/2, C)
    bel = params["b_exc_l"][None, :]               # (1, C)
    beg = params["b_exc_g"][None, :]               # (1, C)
    return wsq_t, wsq_b, bsq, wel, bel, weg, beg


def ffm_forward(L, G, params, *, force_two_pass=False):
    B, C, H, W = L.shape
    HW = H * W
    Lf = L.reshape(B, C, HW)
    Gf = G.reshape(B, C, HW)
    weights = _prep_weights(params, C)

    # fused path streams 2 inputs + 2 outputs, each double-buffered
    slab_bytes = C * HW * Lf.dtype.itemsize
    fused_fits = (8 * slab_bytes) <= (16 * 1024 * 1024)

    if fused_fits and not force_two_pass:
        out_l, out_g = _ffm_fused(Lf, Gf, weights)
    else:
        out_l, out_g = _ffm_two_pass(Lf, Gf, weights)
    return out_l.reshape(B, C, H, W), out_g.reshape(B, C, H, W)


def init_ffm_params(key, inplanes):
    """Deterministic synthetic parameters mirroring FFM.__init__ shapes."""
    hidden = inplanes // 2
    ks = jax.random.split(key, 8)
    return {
        "w_sqz_l": jax.random.normal(ks[0], (hidden, 2 * inplanes), jnp.float32) * 0.05,
        "b_sqz_l": jax.random.normal(ks[1], (hidden,), jnp.float32) * 0.05,
        "w_exc_l": jax.random.normal(ks[2], (inplanes, hidden), jnp.float32) * 0.05,
        "b_exc_l": jax.random.normal(ks[3], (inplanes,), jnp.float32) * 0.05,
        "w_sqz_g": jax.random.normal(ks[4], (hidden, 2 * inplanes), jnp.float32) * 0.05,
        "b_sqz_g": jax.random.normal(ks[5], (hidden,), jnp.float32) * 0.05,
        "w_exc_g": jax.random.normal(ks[6], (inplanes, hidden), jnp.float32) * 0.05,
        "b_exc_g": jax.random.normal(ks[7], (inplanes,), jnp.float32) * 0.05,
    }


def ffm_reference(L, G, params):
    """Pure-JAX reference matching the PyTorch forward exactly."""
    x_l = jnp.mean(L, axis=(2, 3))                       # (B, C)
    x_g = jnp.mean(G, axis=(2, 3))                       # (B, C)
    X = jnp.concatenate([x_l, x_g], axis=1)              # (B, 2C)

    def branch(w_s, b_s, w_e, b_e):
        h = jnp.maximum(X @ w_s.T + b_s, 0.0)
        return jax.nn.sigmoid(h @ w_e.T + b_e)

    s_l = branch(params["w_sqz_l"], params["b_sqz_l"],
                 params["w_exc_l"], params["b_exc_l"])[:, :, None, None]
    s_g = branch(params["w_sqz_g"], params["b_sqz_g"],
                 params["w_exc_g"], params["b_exc_g"])[:, :, None, None]
    return L * s_l + L, G * s_g + G


if __name__ == "__main__":
    B, C, H, W = 2, 32, 8, 8            # inplanes=32 (small synthetic size)
    key = jax.random.PRNGKey(0)
    k_l, k_g, k_p = jax.random.split(key, 3)

    L = jax.random.normal(k_l, (B, C, H, W), jnp.float32)
    G = jax.random.normal(k_g, (B, C, H, W), jnp.float32)
    params = init_ffm_params(k_p, C)

    ref_l, ref_g = ffm_reference(L, G, params)

    # Fused single-pass path (per-batch slab fits VMEM).
    out_l, out_g = ffm_forward(L, G, params)
    jax.block_until_ready((out_l, out_g))
    assert jnp.allclose(out_l, ref_l, atol=1e-4, rtol=1e-4)
    assert jnp.allclose(out_g, ref_g, atol=1e-4, rtol=1e-4)

    # Two-pass streaming path (exercised explicitly for coverage).
    out_l2, out_g2 = ffm_forward(L, G, params, force_two_pass=True)
    jax.block_until_ready((out_l2, out_g2))
    assert jnp.allclose(out_l2, ref_l, atol=1e-4, rtol=1e-4)
    assert jnp.allclose(out_g2, ref_g, atol=1e-4, rtol=1e-4)

    print("KERNEL_OK")
</pallas_src>

<mosaic_0001>
module attributes {stable_mosaic.version = 11 : i64} {
  func.func @_ffm_fused_kernel(%arg0: i32, %arg1: memref<1x32x64xf32, #tpu.memory_space<vmem>>, %arg2: memref<1x32x64xf32, #tpu.memory_space<vmem>>, %arg3: memref<32x32xf32, #tpu.memory_space<vmem>>, %arg4: memref<32x32xf32, #tpu.memory_space<vmem>>, %arg5: memref<1x32xf32, #tpu.memory_space<vmem>>, %arg6: memref<16x32xf32, #tpu.memory_space<vmem>>, %arg7: memref<1x32xf32, #tpu.memory_space<vmem>>, %arg8: memref<16x32xf32, #tpu.memory_space<vmem>>, %arg9: memref<1x32xf32, #tpu.memory_space<vmem>>, %arg10: memref<1x32x64xf32, #tpu.memory_space<vmem>>, %arg11: memref<1x32x64xf32, #tpu.memory_space<vmem>>) attributes {dimension_semantics = [#tpu.dimension_semantics<parallel>], iteration_bounds = array<i64: 2>, scalar_prefetch = 0 : i64, scratch_operands = 0 : i64, tpu.core_type = #tpu.core_type<tc>, window_params = [{transform_indices = @transform_0, window_bounds = array<i64: 1, 32, 64>}, {transform_indices = @transform_1, window_bounds = array<i64: 1, 32, 64>}, {pipeline_mode = #tpu.pipeline_mode<synchronous>, transform_indices = @transform_2, window_bounds = array<i64: 32, 32>}, {pipeline_mode = #tpu.pipeline_mode<synchronous>, transform_indices = @transform_3, window_bounds = array<i64: 32, 32>}, {pipeline_mode = #tpu.pipeline_mode<synchronous>, transform_indices = @transform_4, window_bounds = array<i64: 1, 32>}, {pipeline_mode = #tpu.pipeline_mode<synchronous>, transform_indices = @transform_5, window_bounds = array<i64: 16, 32>}, {pipeline_mode = #tpu.pipeline_mode<synchronous>, transform_indices = @transform_6, window_bounds = array<i64: 1, 32>}, {pipeline_mode = #tpu.pipeline_mode<synchronous>, transform_indices = @transform_7, window_bounds = array<i64: 16, 32>}, {pipeline_mode = #tpu.pipeline_mode<synchronous>, transform_indices = @transform_8, window_bounds = array<i64: 1, 32>}, {transform_indices = @transform_9, window_bounds = array<i64: 1, 32, 64>}, {transform_indices = @transform_10, window_bounds = array<i64: 1, 32, 64>}]} {
    %c0 = arith.constant 0 : index
    %c0_0 = arith.constant 0 : index
    %c0_1 = arith.constant 0 : index
    %0 = vector.load %arg1[%c0, %c0_0, %c0_1] : memref<1x32x64xf32, #tpu.memory_space<vmem>>, vector<1x32x64xf32>
    %cst = arith.constant dense<0.000000e+00> : vector<1x32xf32>
    %1 = vector.multi_reduction <add>, %0, %cst [2] : vector<1x32x64xf32> to vector<1x32xf32>
    %cst_2 = arith.constant 1.562500e-02 : f32
    %2 = vector.broadcast %cst_2 : f32 to vector<1x32xf32>
    %3 = arith.mulf %1, %2 : vector<1x32xf32>
    %c0_3 = arith.constant 0 : index
    %c0_4 = arith.constant 0 : index
    %c0_5 = arith.constant 0 : index
    %4 = vector.load %arg2[%c0_3, %c0_4, %c0_5] : memref<1x32x64xf32, #tpu.memory_space<vmem>>, vector<1x32x64xf32>
    %cst_6 = arith.constant dense<0.000000e+00> : vector<1x32xf32>
    %5 = vector.multi_reduction <add>, %4, %cst_6 [2] : vector<1x32x64xf32> to vector<1x32xf32>
    %cst_7 = arith.constant 1.562500e-02 : f32
    %6 = vector.broadcast %cst_7 : f32 to vector<1x32xf32>
    %7 = arith.mulf %5, %6 : vector<1x32xf32>
    %c0_8 = arith.constant 0 : index
    %c0_9 = arith.constant 0 : index
    %8 = vector.load %arg3[%c0_8, %c0_9] : memref<32x32xf32, #tpu.memory_space<vmem>>, vector<32x32xf32>
    %c0_10 = arith.constant 0 : index
    %c0_11 = arith.constant 0 : index
    %9 = vector.load %arg4[%c0_10, %c0_11] : memref<32x32xf32, #tpu.memory_space<vmem>>, vector<32x32xf32>
    %c0_12 = arith.constant 0 : index
    %c0_13 = arith.constant 0 : index
    %10 = vector.load %arg5[%c0_12, %c0_13] : memref<1x32xf32, #tpu.memory_space<vmem>>, vector<1x32xf32>
    %c0_14 = arith.constant 0 : index
    %c0_15 = arith.constant 0 : index
    %11 = vector.load %arg6[%c0_14, %c0_15] : memref<16x32xf32, #tpu.memory_space<vmem>>, vector<16x32xf32>
    %c0_16 = arith.constant 0 : index
    %c0_17 = arith.constant 0 : index
    %12 = vector.load %arg7[%c0_16, %c0_17] : memref<1x32xf32, #tpu.memory_space<vmem>>, vector<1x32xf32>
    %c0_18 = arith.constant 0 : index
    %c0_19 = arith.constant 0 : index
    %13 = vector.load %arg8[%c0_18, %c0_19] : memref<16x32xf32, #tpu.memory_space<vmem>>, vector<16x32xf32>
    %c0_20 = arith.constant 0 : index
    %c0_21 = arith.constant 0 : index
    %14 = vector.load %arg9[%c0_20, %c0_21] : memref<1x32xf32, #tpu.memory_space<vmem>>, vector<1x32xf32>
    %cst_22 = arith.constant dense<0.000000e+00> : vector<1x32xf32>
    %15 = tpu.matmul %3, %8, %cst_22 {dimension_numbers = #tpu.dot_dimension_numbers<[1], [0], [0], [1], [0, 0, 1, 1], [], []>} : vector<1x32xf32>, vector<32x32xf32>, vector<1x32xf32> -> vector<1x32xf32>
    %cst_23 = arith.constant dense<0.000000e+00> : vector<1x32xf32>
    %16 = tpu.matmul %7, %9, %cst_23 {dimension_numbers = #tpu.dot_dimension_numbers<[1], [0], [0], [1], [0, 0, 1, 1], [], []>} : vector<1x32xf32>, vector<32x32xf32>, vector<1x32xf32> -> vector<1x32xf32>
    %17 = arith.addf %15, %16 : vector<1x32xf32>
    %18 = arith.addf %17, %10 : vector<1x32xf32>
    %cst_24 = arith.constant 0.000000e+00 : f32
    %19 = vector.broadcast %cst_24 : f32 to vector<1x32xf32>
    %20 = arith.maximumf %18, %19 : vector<1x32xf32>
    %21 = vector.extract_strided_slice %20 {offsets = [0, 0], sizes = [1, 16], strides = [1, 1]} : vector<1x32xf32> to vector<1x16xf32>
    %cst_25 = arith.constant dense<0.000000e+00> : vector<1x32xf32>
    %22 = tpu.matmul %21, %11, %cst_25 {dimension_numbers = #tpu.dot_dimension_numbers<[1], [0], [0], [1], [0, 0, 1, 1], [], []>} : vector<1x16xf32>, vector<16x32xf32>, vector<1x32xf32> -> vector<1x32xf32>
    %23 = arith.addf %22, %12 : vector<1x32xf32>
    %24 = arith.negf %23 : vector<1x32xf32>
    %25 = math.exp %24 : vector<1x32xf32>
    %cst_26 = arith.constant 1.000000e+00 : f32
    %26 = vector.broadcast %cst_26 : f32 to vector<1x32xf32>
    %27 = arith.addf %26, %25 : vector<1x32xf32>
    %28 = arith.divf %26, %27 : vector<1x32xf32>
    %cst_27 = arith.constant 1.000000e+00 : f32
    %29 = vector.broadcast %cst_27 : f32 to vector<1x32xf32>
    %30 = arith.addf %28, %29 : vector<1x32xf32>
    %31 = vector.extract_strided_slice %20 {offsets = [0, 16], sizes = [1, 16], strides = [1, 1]} : vector<1x32xf32> to vector<1x16xf32>
    %cst_28 = arith.constant dense<0.000000e+00> : vector<1x32xf32>
    %32 = tpu.matmul %31, %13, %cst_28 {dimension_numbers = #tpu.dot_dimension_numbers<[1], [0], [0], [1], [0, 0, 1, 1], [], []>} : vector<1x16xf32>, vector<16x32xf32>, vector<1x32xf32> -> vector<1x32xf32>
    %33 = arith.addf %32, %14 : vector<1x32xf32>
    %34 = arith.negf %33 : vector<1x32xf32>
    %35 = math.exp %34 : vector<1x32xf32>
    %cst_29 = arith.constant 1.000000e+00 : f32
    %36 = vector.broadcast %cst_29 : f32 to vector<1x32xf32>
    %37 = arith.addf %36, %35 : vector<1x32xf32>
    %38 = arith.divf %36, %37 : vector<1x32xf32>
    %cst_30 = arith.constant 1.000000e+00 : f32
    %39 = vector.broadcast %cst_30 : f32 to vector<1x32xf32>
    %40 = arith.addf %38, %39 : vector<1x32xf32>
    %c0_31 = arith.constant 0 : index
    %c0_32 = arith.constant 0 : index
    %c0_33 = arith.constant 0 : index
    %41 = vector.load %arg1[%c0_31, %c0_32, %c0_33] : memref<1x32x64xf32, #tpu.memory_space<vmem>>, vector<1x32x64xf32>
    %42 = vector.shape_cast %30 : vector<1x32xf32> to vector<1x32x1xf32>
    %43 = vector.broadcast %42 : vector<1x32x1xf32> to vector<1x32x64xf32>
    %44 = arith.mulf %41, %43 : vector<1x32x64xf32>
    %c0_34 = arith.constant 0 : index
    %c0_35 = arith.constant 0 : index
    %c0_36 = arith.constant 0 : index
    %45 = vector.load %arg10[%c0_34, %c0_35, %c0_36] : memref<1x32x64xf32, #tpu.memory_space<vmem>>, vector<1x32x64xf32>
    tpu.vector_store %arg10[%c0_34, %c0_35, %c0_36], %44 {strides = array<i32>} : memref<1x32x64xf32, #tpu.memory_space<vmem>>, vector<1x32x64xf32>,
    %c0_37 = arith.constant 0 : index
    %c0_38 = arith.constant 0 : index
    %c0_39 = arith.constant 0 : index
    %46 = vector.load %arg2[%c0_37, %c0_38, %c0_39] : memref<1x32x64xf32, #tpu.memory_space<vmem>>, vector<1x32x64xf32>
    %47 = vector.shape_cast %40 : vector<1x32xf32> to vector<1x32x1xf32>
    %48 = vector.broadcast %47 : vector<1x32x1xf32> to vector<1x32x64xf32>
    %49 = arith.mulf %46, %48 : vector<1x32x64xf32>
    %c0_40 = arith.constant 0 : index
    %c0_41 = arith.constant 0 : index
    %c0_42 = arith.constant 0 : index
    %50 = vector.load %arg11[%c0_40, %c0_41, %c0_42] : memref<1x32x64xf32, #tpu.memory_space<vmem>>, vector<1x32x64xf32>
    tpu.vector_store %arg11[%c0_40, %c0_41, %c0_42], %49 {strides = array<i32>} : memref<1x32x64xf32, #tpu.memory_space<vmem>>, vector<1x32x64xf32>,
    return
  }
  func.func @transform_0(%arg0: i32) -> (i32, i32, i32) {
    %c0_i32 = arith.constant 0 : i32
    %c0_i32_0 = arith.constant 0 : i32
    %c0_i32_1 = arith.constant 0 : i32
    return %arg0, %c0_i32, %c0_i32_0 : i32, i32, i32
  }
  func.func @transform_1(%arg0: i32) -> (i32, i32, i32) {
    %c0_i32 = arith.constant 0 : i32
    %c0_i32_0 = arith.constant 0 : i32
    %c0_i32_1 = arith.constant 0 : i32
    return %arg0, %c0_i32, %c0_i32_0 : i32, i32, i32
  }
  func.func @transform_2(%arg0: i32) -> (i32, i32) {
    %c0_i32 = arith.constant 0 : i32
    %c0_i32_0 = arith.constant 0 : i32
    %c0_i32_1 = arith.constant 0 : i32
    return %c0_i32, %c0_i32_0 : i32, i32
  }
  func.func @transform_3(%arg0: i32) -> (i32, i32) {
    %c0_i32 = arith.constant 0 : i32
    %c0_i32_0 = arith.constant 0 : i32
    %c0_i32_1 = arith.constant 0 : i32
    return %c0_i32, %c0_i32_0 : i32, i32
  }
  func.func @transform_4(%arg0: i32) -> (i32, i32) {
    %c0_i32 = arith.constant 0 : i32
    %c0_i32_0 = arith.constant 0 : i32
    %c0_i32_1 = arith.constant 0 : i32
    return %c0_i32, %c0_i32_0 : i32, i32
  }
  func.func @transform_5(%arg0: i32) -> (i32, i32) {
    %c0_i32 = arith.constant 0 : i32
    %c0_i32_0 = arith.constant 0 : i32
    %c0_i32_1 = arith.constant 0 : i32
    return %c0_i32, %c0_i32_0 : i32, i32
  }
  func.func @transform_6(%arg0: i32) -> (i32, i32) {
    %c0_i32 = arith.constant 0 : i32
    %c0_i32_0 = arith.constant 0 : i32
    %c0_i32_1 = arith.constant 0 : i32
    return %c0_i32, %c0_i32_0 : i32, i32
  }
  func.func @transform_7(%arg0: i32) -> (i32, i32) {
    %c0_i32 = arith.constant 0 : i32
    %c0_i32_0 = arith.constant 0 : i32
    %c0_i32_1 = arith.constant 0 : i32
    return %c0_i32, %c0_i32_0 : i32, i32
  }
  func.func @transform_8(%arg0: i32) -> (i32, i32) {
    %c0_i32 = arith.constant 0 : i32
    %c0_i32_0 = arith.constant 0 : i32
    %c0_i32_1 = arith.constant 0 : i32
    return %c0_i32, %c0_i32_0 : i32, i32
  }
  func.func @transform_9(%arg0: i32) -> (i32, i32, i32) {
    %c0_i32 = arith.constant 0 : i32
    %c0_i32_0 = arith.constant 0 : i32
    %c0_i32_1 = arith.constant 0 : i32
    return %arg0, %c0_i32, %c0_i32_0 : i32, i32, i32
  }
  func.func @transform_10(%arg0: i32) -> (i32, i32, i32) {
    %c0_i32 = arith.constant 0 : i32
    %c0_i32_0 = arith.constant 0 : i32
    %c0_i32_1 = arith.constant 0 : i32
    return %arg0, %c0_i32, %c0_i32_0 : i32, i32, i32
  }
}

</mosaic_0001>

<bundles_post_ra>
// kernel: tpu_custom_call.1
= control target key start
LH: loop header
LB: loop body
LE: loop exit
PB: predicated region body
PF: predicated region fallthrough
CT: control target
= control target key end

     0   :  { %s2121_s0 = inlined_call_operand.hbm [shape: f32[2,32,64], index: 0, kind: input, shape index: {}]   ;;  %s2122_s1 = inlined_call_operand.hbm [shape: f32[2,32,64], index: 1, kind: input, shape index: {}]   ;;  %s2123_s2 = inlined_call_operand.hbm [shape: f32[32,32], index: 2, kind: input, shape index: {}]   ;;  %s2124_s3 = inlined_call_operand.hbm [shape: f32[32,32], index: 3, kind: input, shape index: {}]   ;;  %s2125_s4 = inlined_call_operand.vmem [shape: f32[1,32], index: 4, kind: input, shape index: {}]   ;;  %s2126_s5 = inlined_call_operand.vmem [shape: f32[16,32], index: 5, kind: input, shape index: {}]   ;;  %s2127_s6 = inlined_call_operand.vmem [shape: f32[1,32], index: 6, kind: input, shape index: {}]   ;;  %s2128_s7 = inlined_call_operand.hbm [shape: f32[16,32], index: 7, kind: input, shape index: {}]   ;;  %s2129_s8 = inlined_call_operand.vmem [shape: f32[1,32], index: 8, kind: input, shape index: {}]   ;;  %s2130_s9 = inlined_call_operand.hbm [shape: f32[2,32,64], index: 9, kind: output, shape index: {0}]   ;;  %s2131_s10 = inlined_call_operand.hbm [shape: f32[2,32,64], index: 10, kind: output, shape index: {1}]  }
   0x1   :  { %2143 = sst [smem:[#allocation23_spill]] %s2121_s0 }
   0x2   :  { %2144 = sst [smem:[#allocation24_spill]] %s2123_s2 }
   0x3   :  { %2145 = sst [smem:[#allocation25_spill]] %s2124_s3 }
   0x4   :  { %2146 = sst [smem:[#allocation26_spill]] %s2128_s7 }
   0x5   :  { %2147 = sst [smem:[#allocation27_spill]] %s2130_s9 }
   0x6   :  { %2148 = sst [smem:[#allocation28_spill]] %s2131_s10 }
   0x7   :  { %16 = vsyncpa [#allocation3], 0 }
   0x8   :  { %18 = vsyncpa [#allocation3 + $0x1], 0 }
   0x9   :  { %19 = vsyncpa [#allocation6], 0 }
   0xa   :  { %21 = vsyncpa [#allocation6 + $0x1], 0 }
   0xb   :  { %22 = vsyncpa [#allocation9], 0 }
   0xc   :  { %23 = vsyncpa [#allocation4], 0 }
   0xd   :  { %25 = vsyncpa [#allocation4 + $0x1], 0 }
   0xe   :  { %26 = vsyncpa [#allocation13], 0 }
   0xf   :  { %28 = vsyncpa [#allocation13 + $0x1], 0  ;;  %s1677_s13 = smov 0   ;;  %s1679_s14 = smov 0  }
  0x10   :  { %s1681_s15 = smov 0   ;;  %s1683_s16 = smov 0  }
  0x11 LB: > { %2149 = sst [smem:[#allocation20_spill]] %s1593_s13  ;;  %s1698_s17 = sadd.s32 4294967295, %s1605_s16   ;;  %s1605_s16 = sphi %s1683_s16, %s2182_s16   ;;  %s1601_s15 = sphi %s1681_s15, %s2181_s15   ;;  %s1597_s14 = sphi %s1679_s14, %s2180_s14   ;;  %s1593_s13 = sphi %s1677_s13, %s2179_s13  }
  0x12   : > { %s1140_s18 = sadd.s32 4294967294, %s1605_s16   ;;  %p54_p0 = scmp.ne.s32.totalorder %s1597_s14, %s1593_s13 }
  0x13   : > { %p2132_p1 = scmp.eq.s32.totalorder %s1698_s17, 0  ;;  %p257_p3 = scmp.eq.s32.totalorder %s1140_s18, 1 }
  0x14   : > { %p1141_p5 = scmp.ge.s32.totalorder %s1605_s16, 1  ;;  %p290_p7 = scmp.lt.s32.totalorder %s1605_s16, 3 }
  0x15   : > { %p1707_p4 = por %p2132_p1, %p54_p0  ;;  %p1712_p6 = por %p257_p3, %p54_p0 }
  0x16   : > { %p1717_p8 = pnand %p1141_p5, %p290_p7  ;;  %s1607_s22 = smov [#allocation7]  }
  0x17   : > { %s2150_s19 = scalar_select %p1707_p4, 1, 0 }
  0x18   : > { %s2151_s20 = scalar_select %p1712_p6, 1, 0 }
  0x19   : > { %s2153_s21 = scalar_select %p1717_p8, 1, 0 }
  0x1a   : > { %2152 = sst [smem:[#allocation21_spill]] %s2151_s20  ;;  %s302_s23 = sshll.u32 %s1607_s22, 4  ;;  %s1721_s23 = int_to_ptr.vmem [resolvable:$true] %s302_s23 }
  0x1b   : > { %p1268_p9 = pneg %p1717_p8  ;;  %s1608_s25 = smov [#allocation8]  }
  0x1c   : > { %s315_s26 = sshll.u32 %s1608_s25, 4  ;;  %s1609_s27 = smov [#allocation10]   ;;  %s1732_s26 = int_to_ptr.vmem [resolvable:$true] %s315_s26 }
  0x1d   : > { %p1728_p11 = pnand %p1268_p9, %p2132_p1  ;;  %s1734_s28 = sshll.u32 %s1609_s27, 4  ;;  %s338_s28 = int_to_ptr.vmem [resolvable:$true] %s1734_s28 }
  0x1e   : > { %s2155_s2 = sld [smem:[#allocation24_spill]] }
  0x1f   : > { %p1744_p13 = pneg %p1728_p11 }
  0x24   : > { %s1351_s11 = scalar_lea.hbm %s2155_s2, 512 }
  0x25   : > { %p1352_p12 = scmp.ne.s32.totalorder %s2155_s2, %s1351_s11  ;;  %p1358_p5 = scmp.lt.u32.totalorder %s1351_s11, %s2155_s2 }
  0x27   : > { %p1354_p0 = pnand %p1744_p13, %p1352_p12 }
  0x29   : > { %p1355_p3 = pneg %p1354_p0 }
  0x2b   : > { %p1360_p7 = pnand %p1358_p5, %p1355_p3 }
  0x2d   : > { %1363 = shalt.err (!%p1360_p7)
}
  0x2e   : > { %s1364_s29 = scalar_lea.vmem %s1721_s23, 512  ;;  %p1372_p2 = scmp.lt.s32.totalorder %s1721_s23, %s1721_s23 }
  0x2f   : > { %p1365_p9 = scmp.ne.s32.totalorder %s1721_s23, %s1364_s29  ;;  %p1373_p6 = scmp.lt.s32.totalorder %s1364_s29, %s1364_s29 }
  0x31   : > { %p1367_p10 = pnand %p1365_p9, %p1744_p13  ;;  %p1374_p12 = por %p1373_p6, %p1372_p2 }
  0x33   : > { %p1368_p1 = pneg %p1367_p10 }
  0x35   : > { %p1375_p0 = pnand %p1374_p12, %p1368_p1 }
  0x37   : > { %1378 = shalt.err (!%p1375_p0)
}
  0x38   : > { %s2139_s30 = smov 128   ;;  %s2141_s11 = smov 8  }
  0x39   : > { %1271 = dma.hbm_to_vmem [thread:$0]  (!%p1728_p11), %s2155_s2, 512, %s1721_s23, [#allocation6], %s2139_s30, %s2139_s30, %s2141_s11  }
  0x3a   : > { %s2157_s3 = sld [smem:[#allocation25_spill]] }
  0x40   : > { %s1379_s29 = scalar_lea.hbm %s2157_s3, 512 }
  0x41   : > { %p1380_p1 = scmp.ne.s32.totalorder %s2157_s3, %s1379_s29  ;;  %p1386_p10 = scmp.lt.u32.totalorder %s1379_s29, %s2157_s3 }
  0x43   : > { %p1382_p2 = pnand %p1380_p1, %p1744_p13 }
  0x45   : > { %p1383_p6 = pneg %p1382_p2 }
  0x47   : > { %p1388_p3 = pnand %p1386_p10, %p1383_p6 }
  0x49   : > { %1391 = shalt.err (!%p1388_p3)
}
  0x4a   : > { %s1392_s23 = scalar_lea.vmem %s1732_s26, 512  ;;  %p1400_p12 = scmp.lt.s32.totalorder %s1732_s26, %s1732_s26 }
  0x4b   : > { %p1393_p5 = scmp.ne.s32.totalorder %s1732_s26, %s1392_s23  ;;  %p1401_p0 = scmp.lt.s32.totalorder %s1392_s23, %s1392_s23 }
  0x4d   : > { %p1395_p7 = pnand %p1393_p5, %p1744_p13  ;;  %p1402_p1 = por %p1401_p0, %p1400_p12 }
  0x4f   : > { %p1396_p9 = pneg %p1395_p7 }
  0x51   : > { %p1403_p2 = pnand %p1402_p1, %p1396_p9 }
  0x53   : > { %1406 = shalt.err (!%p1403_p2)
}
  0x54   : > { %1274 = dma.hbm_to_vmem [thread:$0]  (!%p1728_p11), %s2157_s3, 512, %s1732_s26, [#allocation9], %s2139_s30, %s2139_s30, %s2141_s11  }
  0x55   : > { %s2158_s7 = sld [smem:[#allocation26_spill]] }
  0x5b   : > { %s1407_s12 = scalar_lea.hbm %s2158_s7, 256 }
  0x5c   : > { %p1408_p6 = scmp.ne.s32.totalorder %s2158_s7, %s1407_s12  ;;  %p1414_p5 = scmp.lt.u32.totalorder %s1407_s12, %s2158_s7 }
  0x5e   : > { %p1410_p10 = pnand %p1408_p6, %p1744_p13 }
  0x60   : > { %p1411_p3 = pneg %p1410_p10 }
  0x62   : > { %p1416_p7 = pnand %p1414_p5, %p1411_p3 }
  0x64   : > { %1419 = shalt.err (!%p1416_p7)
}
  0x65   : > { %s1420_s23 = scalar_lea.vmem %s338_s28, 256  ;;  %p1428_p1 = scmp.lt.s32.totalorder %s338_s28, %s338_s28 }
  0x66   : > { %p1421_p9 = scmp.ne.s32.totalorder %s338_s28, %s1420_s23  ;;  %p1429_p2 = scmp.lt.s32.totalorder %s1420_s23, %s1420_s23 }
  0x68   : > { %p1423_p12 = pnand %p1421_p9, %p1744_p13  ;;  %p1430_p4 = por %p1429_p2, %p1428_p1 }
  0x6a   : > { %p1424_p0 = pneg %p1423_p12 }
  0x6c   : > { %p1431_p8 = pnand %p1430_p4, %p1424_p0 }
  0x6e   : > { %1434 = shalt.err (!%p1431_p8)
}
  0x6f   : > { %1277 = dma.hbm_to_vmem [thread:$0]  (!%p1728_p11), %s2158_s7, 256, %s338_s28, [#allocation9], %s2139_s30, %s2139_s30, %s2141_s11  }
  0x70   : > { %s1817_s22 = sadd.s32 1, %s1605_s16   ;;  %s41_s10 = sadd.s32 1, %s1601_s15 }
  0x71   : > { %s38_s24 = ssub.s32 %s1605_s16, %s1817_s22  ;;  %p48_p8 = scmp.ne.s32.totalorder %s1601_s15, %s1597_s14 }
  0x72   : > { %p39_p4 = scmp.eq.s32.totalorder %s38_s24, 0  ;;  %p49_p13 = scmp.eq.s32.totalorder %s1605_s16, 0 }
  0x73   : > { %p1295_p6 = scmp.lt.s32.totalorder %s1605_s16, 2  ;;  %p2160_p3 = scmp.eq.s32.totalorder %s1698_s17, 1 }
  0x74   : > { %s1827_s13 = scalar_select %p39_p4, %s1601_s15, %s41_s10  }
  0x75   : > { %p50_p10 = por %p49_p13, %p48_p8  ;;  %p1831_p5 = por %p2160_p3, %p48_p8 }
  0x76   : > { %2159 = sst [smem:[#allocation22_spill]] %s1827_s13  ;;  %s354_s12 = sand.u32 1, %s1601_s15  }
  0x77   : > { %s1174_s18 = sshll.u32 %s1605_s16, 9  ;;  %s1837_s28 = sshll.u32 %s354_s12, 5 }
  0x78   : > { %s2162_s0 = sld [smem:[#allocation23_spill]]  ;;  %s358_s23 = scalar_lea.vmem [#allocation2], %s1837_s28 }
  0x79   : > { %s365_s26 = sshll.u32 %s358_s23, 4  ;;  %p1845_p11 = pnand %p1295_p6, %p50_p10  ;;  %s1849_s26 = int_to_ptr.vmem [resolvable:$true] %s365_s26 }
  0x7a   : > { %s1854_s25 = scalar_lea.hbm %s2122_s1, %s1174_s18  ;;  %s1856_s27 = scalar_lea.sflag [#allocation3], %s354_s12 }
  0x7b   : > { %p1437_p9 = pneg %p1845_p11 }
  0x7e   : > { %s1842_s29 = scalar_lea.hbm %s2162_s0, %s1174_s18  ;;  %s1440_s2 = scalar_lea.hbm %s2162_s0, 1024 }
  0x7f   : > { %s1435_s30 = scalar_lea.hbm %s1842_s29, 512  ;;  %p1441_p1 = scmp.lt.u32.totalorder %s1842_s29, %s2162_s0 }
  0x80   : > { %p1436_p7 = scmp.ne.s32.totalorder %s1842_s29, %s1435_s30  ;;  %p1442_p2 = scmp.lt.u32.totalorder %s1440_s2, %s1435_s30 }
  0x81   : > { %p1444_p8 = scmp.lt.u32.totalorder %s1435_s30, %s1842_s29 }
  0x82   : > { %p1438_p12 = pnand %p1437_p9, %p1436_p7  ;;  %p1443_p4 = por %p1442_p2, %p1441_p1 }
  0x84   : > { %p1439_p0 = pneg %p1438_p12  ;;  %p1445_p13 = por %p1444_p8, %p1443_p4 }
  0x86   : > { %p1446_p6 = pnand %p1445_p13, %p1439_p0 }
  0x88   : > { %1449 = shalt.err (!%p1446_p6)
}
  0x89   : > { %s1450_s12 = scalar_lea.vmem %s1849_s26, 512  ;;  %s1612_s11 = smov [#allocation2]  }
  0x8a   : > { %p1451_p10 = scmp.ne.s32.totalorder %s1849_s26, %s1450_s12  ;;  %s1455_s18 = sshll.u32 %s1612_s11, 4  ;;  %s1456_s18 = int_to_ptr.vmem [resolvable:$false] %s1455_s18 }
  0x8b   : > { %s1457_s3 = scalar_lea.vmem %s1456_s18, 1024  ;;  %p1458_p12 = scmp.lt.s32.totalorder %s1849_s26, %s1456_s18 }
  0x8c   : > { %p1453_p3 = pnand %p1451_p10, %p1437_p9  ;;  %p1459_p1 = scmp.lt.s32.totalorder %s1457_s3, %s1450_s12 }
  0x8e   : > { %p1454_p7 = pneg %p1453_p3  ;;  %p1460_p2 = por %p1459_p1, %p1458_p12 }
  0x90   : > { %p1461_p4 = pnand %p1460_p2, %p1454_p7 }
  0x92   : > { %1464 = shalt.err (!%p1461_p4)
}
  0x93   : > { %s2164_s2 = smov 8   ;;  %s2165_s7 = smov 128  }
  0x94   : > { %1281 = dma.hbm_to_vmem [thread:$0]  (!%p1845_p11), %s1842_s29, 512, %s1849_s26, %s1856_s27, %s2165_s7, %s2165_s7, %s2164_s2  }
  0x95   : > { %s379_s30 = scalar_lea.vmem [#allocation5], %s1837_s28  ;;  %s375_s10 = sand.u32 1, %s1605_s16  }
  0x96   : > { %s386_s24 = sshll.u32 %s379_s30, 4  ;;  %s1891_s23 = scalar_lea.sflag [#allocation6], %s375_s10  ;;  %s1889_s24 = int_to_ptr.vmem [resolvable:$true] %s386_s24 }
  0x97   : > { %s1465_s12 = scalar_lea.hbm %s1854_s25, 512  ;;  %s1470_s3 = scalar_lea.hbm %s2122_s1, 1024 }
  0x98   : > { %p1466_p0 = scmp.ne.s32.totalorder %s1854_s25, %s1465_s12  ;;  %p1471_p6 = scmp.lt.u32.totalorder %s1854_s25, %s2122_s1 }
  0x99   : > { %p1472_p10 = scmp.lt.u32.totalorder %s1470_s3, %s1465_s12  ;;  %p1474_p7 = scmp.lt.u32.totalorder %s1465_s12, %s1854_s25 }
  0x9a   : > { %p1468_p8 = pnand %p1466_p0, %p1437_p9 }
  0x9b   : > { %p1473_p3 = por %p1472_p10, %p1471_p6 }
  0x9c   : > { %p1469_p13 = pneg %p1468_p8 }
  0x9d   : > { %p1475_p12 = por %p1474_p7, %p1473_p3 }
  0x9f   : > { %p1476_p1 = pnand %p1475_p12, %p1469_p13 }
  0xa1   : > { %1479 = shalt.err (!%p1476_p1)
}
  0xa2   : > { %s1480_s28 = scalar_lea.vmem %s1889_s24, 512  ;;  %s1613_s29 = smov [#allocation5]  }
  0xa3   : > { %p1481_p2 = scmp.ne.s32.totalorder %s1889_s24, %s1480_s28  ;;  %s1485_s26 = sshll.u32 %s1613_s29, 4  ;;  %s1486_s26 = int_to_ptr.vmem [resolvable:$false] %s1485_s26 }
  0xa4   : > { %s1487_s0 = scalar_lea.vmem %s1486_s26, 1024  ;;  %p1488_p8 = scmp.lt.s32.totalorder %s1889_s24, %s1486_s26 }
  0xa5   : > { %p1483_p4 = pnand %p1481_p2, %p1437_p9  ;;  %p1489_p6 = scmp.lt.s32.totalorder %s1487_s0, %s1480_s28 }
  0xa7   : > { %p1484_p0 = pneg %p1483_p4  ;;  %p1490_p10 = por %p1489_p6, %p1488_p8 }
  0xa9   : > { %p1491_p3 = pnand %p1490_p10, %p1484_p0 }
  0xab   : > { %1494 = shalt.err (!%p1491_p3)
}
  0xac   : > { %1284 = dma.hbm_to_vmem [thread:$0]  (!%p1845_p11), %s1854_s25, 512, %s1889_s24, %s1891_s23, %s2165_s7, %s2165_s7, %s2164_s2  }
  0xad   : > { %p2166_p9 = scmp.ne.s32.totalorder %s2153_s21, 0 }
  0xae   : > { %s1923_s13 = sand.u32 (!%p2166_p9), 1, %s1597_s14   ;;  %p2167_p13 = scmp.ne.s32.totalorder (!%p2166_p9), %s2150_s19, 0 }
  0xaf   : > { %398 = sbr.rel (%p2166_p9) target bundleno = 1067 (0x42b), region = 56  ;;  %s1926_s27 = sshll.u32 (!%p2166_p9), %s1923_s13, 5 }
  0xb0   : > { %s401_s9 = scalar_lea.sflag (!%p2166_p9), [#allocation3], %s1923_s13  ;;  %s1930_s30 = scalar_lea.vmem (!%p2166_p9), [#allocation2], %s1926_s27 }
  0xb6   : > { %1568 = dma.done.wait (%p2167_p13), %s401_s9, 512  }
  0xb7   : > { %1570 = vsyncadd (%p2167_p13), %s401_s9, 4294966784  ;;  %s409_s21 = sand.u32 1, %s1698_s17   ;;  %s413_s2 = scalar_lea.vmem [#allocation5], %s1926_s27 }
  0xb8   : > { %s410_s25 = scalar_lea.sflag [#allocation6], %s409_s21 }
  0xb9   : > { %1572 = dma.done.wait (%p2167_p13), %s410_s25, 512  }
  0xba   : > { %1574 = vsyncadd (%p2167_p13), %s410_s25, 4294966784  ;;  %p2168_p11 = scmp.eq.s32.totalorder %s1698_s17, 0 }
  0xbc   : > { %1576 = dma.done.wait (%p2168_p11), [#allocation6], 512   ;;  %p2169_p7 = pmov %p2168_p11 }
  0xbe   : > { %1578 = vsyncadd (%p2169_p7), [#allocation6], 4294966784  ;;  %p2170_p12 = pmov %p2169_p7 }
  0xbf   : > { %p2171_p1 = pmov %p2169_p7 }
  0xc0   : > { %1580 = dma.done.wait (%p2170_p12), [#allocation9], 768  }
  0xc1   : > { %1582 = vsyncadd (%p2171_p1), [#allocation9], 4294966528  ;;  %vm476_vm0 = vcmask 523264   ;;  %v1950_v0 = vld [vmem:[%s413_s2] sm:$0xff]  ;;  %v1955_v2 = vld [vmem:[%s413_s2 + $0x8] sm:$0xff]  ;;  %v1614_v21 = vmov 0.0|0.0   ;;  %v532_v30 = vlaneseq }
  0xc2   : > { %v1953_v1 = vld [vmem:[%s1930_s30] sm:$0xff]  ;;  %v497_v3 = vsel %vm476_vm0, %v1950_v0, 0.0  ;;  %v1962_v5 = vld [vmem:[%s1930_s30 + $0x8] sm:$0xff]  ;;  %v500_v6 = vsel %vm476_vm0, %v1955_v2, 0.0  ;;  %v1968_v8 = vld [vmem:[%s413_s2 + $0x10] sm:$0xff]  ;;  %1230 = vmatprep.subr.bf16.mxu0 %v1614_v21  ;;  %1236 = vmatprep.subr.bf16.mxu1 %v1614_v21  ;;  %vm1615_vm1 = vmmov 0  }
  0xc3   : > { %v477_v4 = vsel %vm476_vm0, %v1953_v1, 0.0  ;;  %498 = vadd.xlane.f32.xlu1 %v497_v3  ;;  %v480_v7 = vsel %vm476_vm0, %v1962_v5, 0.0  ;;  %v1971_v9 = vld [vmem:[%s1930_s30 + $0x10] sm:$0xff]  ;;  %v503_v10 = vsel %vm476_vm0, %v1968_v8, 0.0  ;;  %v1977_v12 = vld [vmem:[%s413_s2 + $0x18] sm:$0xff]  ;;  %v517_v16 = vld [vmem:[#allocation8] sm:$0xff] }
  0xc4   : > { %478 = vadd.xlane.f32.xlu0 %v477_v4  ;;  %v483_v11 = vsel %vm476_vm0, %v1971_v9, 0.0  ;;  %v1980_v13 = vld [vmem:[%s1930_s30 + $0x18] sm:$0xff]  ;;  %v506_v14 = vsel %vm476_vm0, %v1977_v12, 0.0  ;;  %v518_v17 = vld [vmem:[#allocation8 + $0x8] sm:$0xff]  ;;  %v513_v18 = vld [vmem:[#allocation7] sm:$0xff]  ;;  %v1616_v29 = vmov 0.0  }
  0xc5   : > { %v486_v15 = vsel %vm476_vm0, %v1980_v13, 0.0  ;;  %v1231_v19 = vpack.c.bf16 %v518_v17, %v517_v16  ;;  %v514_v20 = vld [vmem:[#allocation7 + $0x8] sm:$0xff]  ;;  %v519_v23 = vld [vmem:[#allocation8 + $0x10] sm:$0xff]  ;;  %v520_v24 = vld [vmem:[#allocation8 + $0x18] sm:$0xff]  ;;  %1202 = vmatprep.mubr.msk.f32.mxu0 %vm1615_vm1, %v1616_v29  ;;  %1213 = vmatprep.mubr.msk.f32.mxu1 %vm1615_vm1, %v1616_v29  ;;  %v533_v33 = vand.u32 127, %v532_v30  ;;  %v1988_v35 = vshrl.u32 %v532_v30, 7 }
  0xc6   : > { %v1237_v22 = vpack.c.bf16 %v514_v20, %v513_v18  ;;  %v515_v25 = vld [vmem:[#allocation7 + $0x10] sm:$0xff]  ;;  %v1234_v26 = vpack.c.bf16 %v520_v24, %v519_v23  ;;  %v516_v27 = vld [vmem:[#allocation7 + $0x18] sm:$0xff]  ;;  %vm543_vm2 = vcmask 130112   ;;  %vm550_vm3 = vcmask 195712   ;;  %v525_v17 = vld [vmem:[#allocation10] sm:$0xff]  ;;  %s1617_s11 = smov 112  }
  0xc7   : > { %501 = vadd.xlane.f32.xlu1 %v500_v6  ;;  %1232 = vmatpush3.bf16.msra.mxu0 %v1231_v19  ;;  %v1240_v28 = vpack.c.bf16 %v516_v27, %v515_v25  ;;  %v538_v34 = vadd.s32 4294967288, %v533_v33  ;;  %v545_v38 = vadd.s32 4294967280, %v533_v33  ;;  %v552_v42 = vadd.s32 4294967272, %v533_v33  ;;  %v526_v18 = vld [vmem:[#allocation10 + $0x8] sm:$0xff]  ;;  %s464_s26 = scalar_lea.vmem [#allocation11], %s1926_s27  ;;  %s1176_s9 = sshll.u32 %s1698_s17, 9 }
  0xc8   : > { %481 = vadd.xlane.f32.xlu0 %v480_v7  ;;  %1238 = vmatpush3.bf16.msra.mxu1 %v1237_v22  ;;  %v536_v43 = vsub.s32 %v533_v33, %v1988_v35  ;;  %vm557_vm4 = vcmask 261312   ;;  %vm559_vm5 = vcmask 261120   ;;  %v1246_v19 = vpack.c.bf16 %v526_v18, %v525_v17  ;;  %s968_s0 = sshll.u32 %s464_s26, 4  ;;  %s2172_s25 = sld [smem:[#allocation27_spill]]  ;;  %s2019_s0 = int_to_ptr.vmem [resolvable:$true] %s968_s0 }
  0xc9   : > { %1233 = vmatprep.subr.bf16.mxu0 %v1614_v21  ;;  %1239 = vmatprep.subr.bf16.mxu1 %v1614_v21  ;;  %v541_v39 = vsub.s32 %v538_v34, %v1988_v35  ;;  %v548_v44 = vsub.s32 %v545_v38, %v1988_v35  ;;  %v555_v53 = vsub.s32 %v552_v42, %v1988_v35  ;;  %vm729_vm6 = vcmask 130048   ;;  %s950_s19 = scalar_lea.sflag [#allocation4], %s1923_s13  ;;  %s1495_s7 = scalar_lea.vmem %s2019_s0, 512 }
  0xca   : > { %p1496_p2 = scmp.ne.s32.totalorder %s2019_s0, %s1495_s7  ;;  %s1618_s24 = smov [#allocation11]  }
  0xcb   : > { %504 = vadd.xlane.f32.xlu1 %v503_v10  ;;  %1235 = vmatpush3.bf16.msra.mxu0 %v1234_v26  ;;  %s1499_s10 = sshll.u32 %s1618_s24, 4  ;;  %s1500_s10 = int_to_ptr.vmem [resolvable:$false] %s1499_s10 }
  0xcc   : > { %484 = vadd.xlane.f32.xlu0 %v483_v11  ;;  %1241 = vmatpush3.bf16.msra.mxu1 %v1240_v28  ;;  %p1497_p4 = pnand %p1496_p2, %p1831_p5  ;;  %s1501_s23 = scalar_lea.vmem %s1500_s10, 1024 }
  0xcd   : > { %1242 = vmatprep.subr.bf16.mxu0 %v1614_v21  ;;  %1245 = vmatprep.subr.bf16.mxu1 %v1614_v21  ;;  %v521_v21 = vld [vmem:[%s2125_s4] sm:$0x1]  ;;  %p1502_p8 = scmp.lt.s32.totalorder %s2019_s0, %s1500_s10  ;;  %p1503_p6 = scmp.lt.s32.totalorder %s1501_s23, %s1495_s7 }
  0xce   : > { %s2027_s2 = scalar_lea.hbm %s2172_s25, %s1176_s9  ;;  %p1498_p0 = pneg %p1497_p4 }
  0xcf   : > { %507 = vadd.xlane.f32.xlu1 %v506_v14  ;;  %v522_v14 = vld [vmem:[%s2126_s5] sm:$0xff]  ;;  %p1504_p10 = por %p1503_p6, %p1502_p8 }
  0xd0   : > { %487 = vadd.xlane.f32.xlu0 %v486_v15  ;;  %v523_v15 = vld [vmem:[%s2126_s5 + $0x8] sm:$0xff] }
  0xd1   : > { %v1243_v16 = vpack.c.bf16 %v523_v15, %v522_v14  ;;  %p1505_p3 = pnand %p1504_p10, %p1498_p0 }
 0x150   : > { %v499_v31 = vpop.xlane.xlu1 %498 }
 0x151   : > { %v479_v32 = vpop.xlane.xlu0 %478  ;;  %v509_v47 = vmul.f32 0.015625, %v499_v31 }
 0x152   : > { %v489_v48 = vmul.f32 0.015625, %v479_v32 }
 0x153   : > { %v537_v58 = vrot.slane %v509_v47, %v536_v43 }
 0x154   : > { %v502_v36 = vpop.xlane.xlu1 %501  ;;  %v639_v59 = vrot.slane %v489_v48, %v536_v43 }
 0x155   : > { %v482_v37 = vpop.xlane.xlu0 %481  ;;  %v510_v40 = vmul.f32 0.015625, %v502_v36 }
 0x156   : > { %v490_v41 = vmul.f32 0.015625, %v482_v37  ;;  %v893_v37 = vsub.s32 0, %v1988_v35 }
 0x157   : > { %v542_v51 = vrot.slane %v510_v40, %v541_v39 }
 0x158   : > { %v505_v45 = vpop.xlane.xlu1 %504  ;;  %v643_v52 = vrot.slane %v490_v41, %v541_v39  ;;  %v527_v41 = vld [vmem:[%s2129_s8] sm:$0x1] }
 0x159   : > { %v485_v46 = vpop.xlane.xlu0 %484  ;;  %v511_v49 = vmul.f32 0.015625, %v505_v45  ;;  %v544_v62 = vsel %vm543_vm2, %v542_v51, %v537_v58 }
 0x15a   : > { %v491_v50 = vmul.f32 0.015625, %v485_v46  ;;  %v644_v63 = vsel %vm543_vm2, %v643_v52, %v639_v59 }
 0x15b   : > { %v549_v54 = vrot.slane %v511_v49, %v548_v44 }
 0x15c   : > { %v648_v55 = vrot.slane %v491_v50, %v548_v44  ;;  %v508_v56 = vpop.xlane.xlu1 %507 }
 0x15d   : > { %v488_v57 = vpop.xlane.xlu0 %487  ;;  %v512_v60 = vmul.f32 0.015625, %v508_v56  ;;  %v551_v6 = vsel %vm550_vm3, %v549_v54, %v544_v62 }
 0x15e   : > { %v492_v61 = vmul.f32 0.015625, %v488_v57  ;;  %v649_v7 = vsel %vm550_vm3, %v648_v55, %v644_v63 }
 0x15f   : > { %v556_v3 = vrot.slane %v512_v60, %v555_v53 }
 0x160   : > { %v653_v4 = vrot.slane %v492_v61, %v555_v53 }
 0x161   : > { %v558_v10 = vsel %vm557_vm4, %v556_v3, %v551_v6 }
 0x162   : > { %v654_v11 = vsel %vm557_vm4, %v653_v4, %v649_v7  ;;  %1203 = vmatmul.mubr.msk.f32.vlgmr.msra.gmra.mrb[0].mxu0 %vm559_vm5, %v558_v10 }
 0x163   : > { %1214 = vmatmul.mubr.msk.f32.vlgmr.msra.gmra.mrb[0].mxu1 %vm559_vm5, %v654_v11  ;;  %1220 = vmatprep.mubr.msk.f32.mxu0 %vm1615_vm1, %v1616_v29 }
 0x164   : > { %1227 = vmatprep.mubr.msk.f32.mxu1 %vm1615_vm1, %v1616_v29  ;;  %1244 = vmatpush3.bf16.msra.mxu0 %v1243_v16  ;;  %v524_v29 = vld [vmem:[%s2127_s6] sm:$0x1] }
 0x165   : > { %1247 = vmatpush3.bf16.msra.mxu1 %v1246_v19 }
 0x235   : > { %v628_v20 = vpop.f32.mrb[0].mxu0 }
 0x236   : > { %v723_v22 = vpop.f32.mrb[0].mxu1  ;;  %v1204_v24 = vpop.f32.mrb[1].mxu0 }
 0x237   : > { %v724_v23 = vadd.f32 %v723_v22, %v628_v20  ;;  %v1215_v25 = vpop.f32.mrb[1].mxu1 }
 0x239   : > { %v727_v26 = vadd.f32 %v724_v23, %v521_v21 }
 0x23b   : > { %v728_v27 = vmax.f32 %v727_v26, 0.0 }
 0x23d   : > { %810 = vrot.lane.b32.xlu0 %v728_v27, %s1617_s11  ;;  %1221 = vmatmul.mubr.msk.f32.vlgmr.msra.gmra.mrb[2].mxu0 %vm729_vm6, %v728_v27 }
 0x2af   : > { %v811_v28 = vpop.permute.xlu0 %810 }
 0x2b0   : > { %1228 = vmatmul.mubr.msk.f32.vlgmr.msra.gmra.mrb[2].mxu1 %vm729_vm6, %v811_v28 }
 0x310   : > { %v799_v30 = vpop.f32.mrb[2].mxu0 }
 0x311   : > { %v800_v31 = vadd.f32 %v799_v30, %v524_v29  ;;  %v1222_v32 = vpop.f32.mrb[3].mxu0 }
 0x313   : > { %v1163_v33 = vmul.f32 -1.442695, %v800_v31 }
 0x315   : > { %1343 = vpow2.f32 %v1163_v33 }
 0x31f   : > { %v1344_v34 = vpop.eup %1343 }
 0x320   : > { %v806_v36 = vadd.f32 1.0, %v1344_v34 }
 0x322   : > { %1345 = vrcp.f32 %v806_v36 }
 0x32c   : > { %v1346_v38 = vpop.eup %1345 }
 0x32d   : > { %v809_v39 = vadd.f32 1.0, %v1346_v38 }
 0x32f   : > { %v894_v40 = vrot.slane %v809_v39, %v893_v37 }
 0x331   : > { %908 = vbcast.lane.b32.xlu0 %v894_v40, 280  ;;  %896 = vbcast.lane.b32.xlu1 %v894_v40, 256 }
 0x335   : > { %900 = vbcast.lane.b32.xlu1 %v894_v40, 264 }
 0x339   : > { %904 = vbcast.lane.b32.xlu1 %v894_v40, 272 }
 0x383   : > { %v880_v42 = vpop.f32.mrb[2].mxu1 }
 0x384   : > { %v881_v43 = vadd.f32 %v880_v42, %v527_v41  ;;  %v1229_v44 = vpop.f32.mrb[3].mxu1 }
 0x386   : > { %v1165_v45 = vmul.f32 -1.442695, %v881_v43 }
 0x388   : > { %1347 = vpow2.f32 %v1165_v45 }
 0x392   : > { %v1348_v46 = vpop.eup %1347 }
 0x393   : > { %v887_v47 = vadd.f32 1.0, %v1348_v46 }
 0x395   : > { %1349 = vrcp.f32 %v887_v47 }
 0x39f   : > { %v1350_v35 = vpop.eup %1349 }
 0x3a0   : > { %v890_v48 = vadd.f32 1.0, %v1350_v35 }
 0x3a2   : > { %v925_v49 = vrot.slane %v890_v48, %v893_v37 }
 0x3a3   : > { %v909_v50 = vpop.permute.xlu0 %908  ;;  %v897_v51 = vpop.permute.xlu1 %896 }
 0x3a4   : > { %v913_v52 = vmul.f32 %v909_v50, %v1980_v13  ;;  %v910_v53 = vmul.f32 %v897_v51, %v1953_v1  ;;  %931 = vbcast.lane.b32.xlu0 %v925_v49, 264  ;;  %927 = vbcast.lane.b32.xlu1 %v925_v49, 256 }
 0x3a6   : > { %917 = vst.msk [vmem:[%s464_s26 + $0x18] sm:$0xff] %vm476_vm0, %v913_v52  ;;  %914 = vst.msk [vmem:[%s464_s26] sm:$0xff] %vm476_vm0, %v910_v53 }
 0x3a7   : > { %v901_v54 = vpop.permute.xlu1 %900 }
 0x3a8   : > { %v911_v55 = vmul.f32 %v901_v54, %v1962_v5  ;;  %939 = vbcast.lane.b32.xlu0 %v925_v49, 280  ;;  %935 = vbcast.lane.b32.xlu1 %v925_v49, 272 }
 0x3aa   : > { %915 = vst.msk [vmem:[%s464_s26 + $0x8] sm:$0xff] %vm476_vm0, %v911_v55 }
 0x3ab   : > { %v905_v1 = vpop.permute.xlu1 %904 }
 0x3ac   : > { %v912_v13 = vmul.f32 %v905_v1, %v1971_v9 }
 0x3ae   : > { %916 = vst.msk [vmem:[%s464_s26 + $0x10] sm:$0xff] %vm476_vm0, %v912_v13 }
 0x3af   : > { %1508 = shalt.err (!%p1505_p3)
}
 0x3b0   : > { %s1509_s12 = scalar_lea.hbm %s2027_s2, 512  ;;  %s1513_s3 = scalar_lea.hbm %s2172_s25, 1024 }
 0x3b1   : > { %p1510_p9 = scmp.ne.s32.totalorder %s2027_s2, %s1509_s12  ;;  %p1514_p7 = scmp.lt.u32.totalorder %s2027_s2, %s2172_s25 }
 0x3b2   : > { %p1515_p12 = scmp.lt.u32.totalorder %s1513_s3, %s1509_s12  ;;  %p1517_p2 = scmp.lt.u32.totalorder %s1509_s12, %s2027_s2 }
 0x3b3   : > { %p1511_p13 = pnand %p1510_p9, %p1831_p5 }
 0x3b4   : > { %p1516_p1 = por %p1515_p12, %p1514_p7 }
 0x3b5   : > { %p1512_p11 = pneg %p1511_p13 }
 0x3b6   : > { %p1518_p4 = por %p1517_p2, %p1516_p1 }
 0x3b8   : > { %p1519_p0 = pnand %p1518_p4, %p1512_p11 }
 0x3ba   : > { %1522 = shalt.err (!%p1519_p0)
}
 0x3bb   : > { %s1619_s26 = smov 128   ;;  %s1620_s30 = smov 8  }
 0x3bc   : > { %1264 = dma.vmem_to_hbm [thread:$0]  (%p1831_p5), %s2019_s0, 512, %s2027_s2, %s950_s19, %s1619_s26, %s1619_s26, %s1620_s30  }
 0x3bd   : > { %s471_s21 = scalar_lea.vmem [#allocation12], %s1926_s27  ;;  %s2173_s2 = sld [smem:[#allocation28_spill]] }
 0x3be   : > { %s984_s7 = sshll.u32 %s471_s21, 4  ;;  %s955_s24 = scalar_lea.sflag [#allocation13], %s1923_s13  ;;  %s2063_s7 = int_to_ptr.vmem [resolvable:$true] %s984_s7 }
 0x3bf   : > { %s1523_s10 = scalar_lea.vmem %s2063_s7, 512  ;;  %s1621_s23 = smov [#allocation12]  }
 0x3c0   : > { %p1524_p8 = scmp.ne.s32.totalorder %s2063_s7, %s1523_s10  ;;  %s1527_s12 = sshll.u32 %s1621_s23, 4  ;;  %s1528_s12 = int_to_ptr.vmem [resolvable:$false] %s1527_s12 }
 0x3c1   : > { %s1529_s11 = scalar_lea.vmem %s1528_s12, 1024  ;;  %p1530_p3 = scmp.lt.s32.totalorder %s2063_s7, %s1528_s12 }
 0x3c2   : > { %p1525_p6 = pnand %p1524_p8, %p1831_p5  ;;  %p1531_p9 = scmp.lt.s32.totalorder %s1529_s11, %s1523_s10 }
 0x3c3   : > { %s2072_s19 = scalar_lea.hbm %s2173_s2, %s1176_s9 }
 0x3c4   : > { %p1526_p10 = pneg %p1525_p6  ;;  %p1532_p13 = por %p1531_p9, %p1530_p3 }
 0x3c6   : > { %p1533_p11 = pnand %p1532_p13, %p1526_p10 }
 0x416   : > { %v932_v5 = vpop.permute.xlu0 %931  ;;  %v928_v9 = vpop.permute.xlu1 %927 }
 0x417   : > { %v942_v56 = vmul.f32 %v932_v5, %v1955_v2  ;;  %v941_v57 = vmul.f32 %v928_v9, %v1950_v0 }
 0x419   : > { %946 = vst.msk [vmem:[%s471_s21 + $0x8] sm:$0xff] %vm476_vm0, %v942_v56  ;;  %945 = vst.msk [vmem:[%s471_s21] sm:$0xff] %vm476_vm0, %v941_v57 }
 0x41a   : > { %v940_v58 = vpop.permute.xlu0 %939  ;;  %v936_v59 = vpop.permute.xlu1 %935 }
 0x41b   : > { %v944_v60 = vmul.f32 %v940_v58, %v1977_v12  ;;  %v943_v61 = vmul.f32 %v936_v59, %v1968_v8 }
 0x41d   : > { %948 = vst.msk [vmem:[%s471_s21 + $0x18] sm:$0xff] %vm476_vm0, %v944_v60  ;;  %947 = vst.msk [vmem:[%s471_s21 + $0x10] sm:$0xff] %vm476_vm0, %v943_v61 }
 0x41e   : > { %1536 = shalt.err (!%p1533_p11)
}
 0x41f   : > { %s1537_s17 = scalar_lea.hbm %s2072_s19, 512  ;;  %s1541_s3 = scalar_lea.hbm %s2173_s2, 1024 }
 0x420   : > { %p1538_p7 = scmp.ne.s32.totalorder %s2072_s19, %s1537_s17  ;;  %p1542_p2 = scmp.lt.u32.totalorder %s2072_s19, %s2173_s2 }
 0x421   : > { %p1543_p4 = scmp.lt.u32.totalorder %s1541_s3, %s1537_s17  ;;  %p1545_p8 = scmp.lt.u32.totalorder %s1537_s17, %s2072_s19 }
 0x422   : > { %p1539_p12 = pnand %p1538_p7, %p1831_p5 }
 0x423   : > { %p1544_p0 = por %p1543_p4, %p1542_p2 }
 0x424   : > { %p1540_p1 = pneg %p1539_p12 }
 0x425   : > { %p1546_p6 = por %p1545_p8, %p1544_p0 }
 0x427   : > { %p1547_p10 = pnand %p1546_p6, %p1540_p1 }
 0x429   : > { %1550 = shalt.err (!%p1547_p10)
}
 0x42a   : > { %1265 = dma.vmem_to_hbm [thread:$0]  (%p1831_p5), %s2063_s7, 512, %s2072_s19, %s955_s24, %s1619_s26, %s1619_s26, %s1620_s30  }
 0x42b PF: > { %s2174_s21 = sld [smem:[#allocation20_spill]]  ;;  %s2175_s27 = sld [smem:[#allocation21_spill]] }
 0x42c   : > { %p2177_p9 = scmp.ge.s32.totalorder %s1605_s16, 2 }
 0x431   : > { %s999_s0 = sand.u32 1, %s2174_s21   ;;  %p2176_p3 = scmp.ne.s32.totalorder %s2175_s27, 0 }
 0x432   : > { %s1000_s10 = scalar_lea.sflag [#allocation4], %s999_s0 }
 0x433   : > { %p1286_p13 = pnand %p2177_p9, %p2176_p3 }
 0x435   : > { %1584 = dma.done.wait (!%p1286_p13), %s1000_s10, 512  }
 0x436   : > { %1586 = vsyncadd (!%p1286_p13), %s1000_s10, 4294966784  ;;  %s1009_s20 = scalar_lea.sflag [#allocation13], %s999_s0 }
 0x437   : > { %1588 = dma.done.wait (!%p1286_p13), %s1009_s20, 512  }
 0x438   : > { %1590 = vsyncadd (!%p1286_p13), %s1009_s20, 4294966784  ;;  %s2178_s23 = sld [smem:[#allocation22_spill]]  ;;  %p31_p5 = scmp.ge.s32.totalorder %s1817_s22, 4  }
 0x439   : > { %s2179_s13 = smov %s1597_s14  ;;  %s2180_s14 = smov %s1601_s15 }
 0x43a   : > { %s2182_s16 = smov %s1817_s22  ;;  %33 = sbr.rel (!%p31_p5) target bundleno = 17 (0x11), region = 143 }
 0x43e   : > { %s2181_s15 = smov %s2178_s23 }
 0x441   :  { %1014 = vsyncpa [#allocation3], 1 }
 0x442   :  { %1016 = vsyncpa [#allocation3 + $0x1], 1 }
 0x443   :  { %1017 = vsyncpa [#allocation6], 1 }
 0x444   :  { %1019 = vsyncpa [#allocation6 + $0x1], 1 }
 0x445   :  { %1020 = vsyncpa [#allocation9], 1 }
 0x446   :  { %1021 = vsyncpa [#allocation4], 1 }
 0x447   :  { %1023 = vsyncpa [#allocation4 + $0x1], 1 }
 0x448   :  { %1024 = vsyncpa [#allocation13], 1 }
 0x449   :  { %1026 = vsyncpa [#allocation13 + $0x1], 1 }

</bundles_post_ra>
